<compile_context>
chip_gen: v6e
topology: v6e:2x2x1
jax: 0.10.0
libtpu: 0.0.40
codegen_flags: <defaults>
</compile_context>

<pallas_src>
import functools

import jax
import jax.numpy as jnp
from jax.experimental import pallas as pl
from jax.experimental.pallas import tpu as pltpu


def _triplet_kernel(a_ref, p_ref, n_ref, o_ref, *, margin, batch, tb):
    """One batch tile: partial sum of relu(||a-p||^2 - ||a-n||^2 + margin)."""
    i = pl.program_id(0)

    a = a_ref[...]
    p = p_ref[...]
    n = n_ref[...]
    if a.dtype != jnp.float32:          # only cast when inputs are not f32
        a = a.astype(jnp.float32)
        p = p.astype(jnp.float32)
        n = n.astype(jnp.float32)

    dp = a - p
    dn = a - n
    # Fused distances: one elementwise diff-of-squares (VPU), then a single
    # cross-lane reduction (XLU) instead of two separate axis-1 sums.
    diff = dp * dp - dn * dn                              # (tb, D)
    row = jnp.sum(diff, axis=1, keepdims=True)            # (tb, 1)
    losses = jnp.maximum(row + margin, 0.0)               # (tb, 1)

    if batch % tb != 0:
        # Zero the padded rows (they would otherwise each contribute `margin`).
        rows = i * tb + jax.lax.broadcasted_iota(jnp.int32, (tb, 1), 0)
        losses = jnp.where(rows < batch, losses, 0.0)

    tile_sum = jnp.sum(losses)                            # scalar partial sum
    # Broadcast into a full (1, 8, 128) block -> unmasked, lane-dense stores.
    o_ref[...] = jnp.broadcast_to(tile_sum, o_ref.shape).astype(o_ref.dtype)


def triplet_loss(anchor, positive, negative, margin=1.0, *, tb=None,
                 vmem_tile_budget_bytes=12 * 1024 * 1024):
    """Pallas implementation of TripletLoss.forward. Returns a scalar."""
    B, D = anchor.shape
    assert positive.shape == (B, D) and negative.shape == (B, D)

    itemsize = jnp.dtype(anchor.dtype).itemsize
    # Sublane packing: f32 -> 8 rows/vreg, bf16 -> 16, int8/fp8 -> 32.
    align = {4: 8, 2: 16, 1: 32}.get(itemsize, 8)

    if tb is None:
        # 3 input streams x 2 pipeline buffers each must fit the tile budget.
        tb = vmem_tile_budget_bytes // (3 * 2 * D * itemsize)
        tb = max(align, (tb // align) * align)
    # Small problems: one full-array block, grid of size 1 (no loop overhead).
    b_align = ((B + align - 1) // align) * align
    tb = min(tb, b_align)
    tb = max(align, (tb // align) * align)

    b_pad = ((B + tb - 1) // tb) * tb
    if b_pad != B:
        pad = ((0, b_pad - B), (0, 0))
        anchor = jnp.pad(anchor, pad)
        positive = jnp.pad(positive, pad)
        negative = jnp.pad(negative, pad)

    grid = (b_pad // tb,)
    kernel = functools.partial(
        _triplet_kernel, margin=float(margin), batch=B, tb=tb)

    row_spec = pl.BlockSpec((tb, D), lambda i: (i, 0))
    partials = pl.pallas_call(
        kernel,
        out_shape=jax.ShapeDtypeStruct((grid[0], 8, 128), jnp.float32),
        grid=grid,
        in_specs=[row_spec, row_spec, row_spec],
        out_specs=pl.BlockSpec((1, 8, 128), lambda i: (i, 0, 0)),
        compiler_params=pltpu.CompilerParams(
            dimension_semantics=("parallel",),     # megacore-shardable on v7x
            vmem_limit_bytes=32 * 1024 * 1024,     # safe on v5e/v6e/v7x
        ),
    )(anchor, positive, negative)

    # Final reduction over per-tile partial sums (tiny) + mean.
    return jnp.sum(partials[:, 0, 0]) / jnp.float32(B)


if __name__ == "__main__":
    key = jax.random.PRNGKey(0)
    ka, kp, kn = jax.random.split(key, 3)

    B, D = 16, 32  # small test shapes; wrapper collapses this to a single tile
    anchor = jax.random.normal(ka, (B, D), dtype=jnp.float32)
    positive = jax.random.normal(kp, (B, D), dtype=jnp.float32)
    negative = jax.random.normal(kn, (B, D), dtype=jnp.float32)

    loss = triplet_loss(anchor, positive, negative, margin=1.0)
    loss = jax.block_until_ready(loss)

    # pure-JAX reference (same math as the PyTorch module)
    dp = jnp.sum((anchor - positive) ** 2, axis=1)
    dn = jnp.sum((anchor - negative) ** 2, axis=1)
    ref = jnp.mean(jnp.maximum(dp - dn + 1.0, 0.0))
    assert jnp.allclose(loss, ref, rtol=1e-5, atol=1e-5), (loss, ref)

    print("KERNEL_OK")
</pallas_src>

<mosaic_0001>
module attributes {stable_mosaic.version = 11 : i64} {
  func.func @_triplet_kernel(%arg0: i32, %arg1: memref<16x32xf32, #tpu.memory_space<vmem>>, %arg2: memref<16x32xf32, #tpu.memory_space<vmem>>, %arg3: memref<16x32xf32, #tpu.memory_space<vmem>>, %arg4: memref<1x8x128xf32, #tpu.memory_space<vmem>>) attributes {dimension_semantics = [#tpu.dimension_semantics<parallel>], iteration_bounds = array<i64: 1>, scalar_prefetch = 0 : i64, scratch_operands = 0 : i64, tpu.core_type = #tpu.core_type<tc>, window_params = [{transform_indices = @transform_0, window_bounds = array<i64: 16, 32>}, {transform_indices = @transform_1, window_bounds = array<i64: 16, 32>}, {transform_indices = @transform_2, window_bounds = array<i64: 16, 32>}, {transform_indices = @transform_3, window_bounds = array<i64: 1, 8, 128>}]} {
    %c0 = arith.constant 0 : index
    %c0_0 = arith.constant 0 : index
    %0 = vector.load %arg1[%c0, %c0_0] : memref<16x32xf32, #tpu.memory_space<vmem>>, vector<16x32xf32>
    %c0_1 = arith.constant 0 : index
    %c0_2 = arith.constant 0 : index
    %1 = vector.load %arg2[%c0_1, %c0_2] : memref<16x32xf32, #tpu.memory_space<vmem>>, vector<16x32xf32>
    %c0_3 = arith.constant 0 : index
    %c0_4 = arith.constant 0 : index
    %2 = vector.load %arg3[%c0_3, %c0_4] : memref<16x32xf32, #tpu.memory_space<vmem>>, vector<16x32xf32>
    %3 = arith.subf %0, %1 : vector<16x32xf32>
    %4 = arith.subf %0, %2 : vector<16x32xf32>
    %5 = arith.mulf %3, %3 : vector<16x32xf32>
    %6 = arith.mulf %4, %4 : vector<16x32xf32>
    %7 = arith.subf %5, %6 : vector<16x32xf32>
    %cst = arith.constant dense<0.000000e+00> : vector<16xf32>
    %8 = vector.multi_reduction <add>, %7, %cst [1] : vector<16x32xf32> to vector<16xf32>
    %9 = vector.shape_cast %8 : vector<16xf32> to vector<16x1xf32>
    %cst_5 = arith.constant 1.000000e+00 : f32
    %10 = vector.broadcast %cst_5 : f32 to vector<16x1xf32>
    %11 = arith.addf %9, %10 : vector<16x1xf32>
    %cst_6 = arith.constant 0.000000e+00 : f32
    %12 = vector.broadcast %cst_6 : f32 to vector<16x1xf32>
    %13 = arith.maximumf %11, %12 : vector<16x1xf32>
    %14 = vector.shape_cast %13 : vector<16x1xf32> to vector<1x16x1xf32>
    %cst_7 = arith.constant dense<0.000000e+00> : vector<1xf32>
    %15 = vector.multi_reduction <add>, %14, %cst_7 [1, 2] : vector<1x16x1xf32> to vector<1xf32>
    %16 = vector.shape_cast %15 : vector<1xf32> to vector<1x1x1xf32>
    %17 = vector.extract %16[0, 0, 0] : f32 from vector<1x1x1xf32>
    %18 = vector.broadcast %17 : f32 to vector<1x8x128xf32>
    %c0_8 = arith.constant 0 : index
    %c0_9 = arith.constant 0 : index
    %c0_10 = arith.constant 0 : index
    %19 = vector.load %arg4[%c0_8, %c0_9, %c0_10] : memref<1x8x128xf32, #tpu.memory_space<vmem>>, vector<1x8x128xf32>
    tpu.vector_store %arg4[%c0_8, %c0_9, %c0_10], %18 {strides = array<i32>} : memref<1x8x128xf32, #tpu.memory_space<vmem>>, vector<1x8x128xf32>,
    return
  }
  func.func @transform_0(%arg0: i32) -> (i32, i32) {
    %c0_i32 = arith.constant 0 : i32
    %c0_i32_0 = arith.constant 0 : i32
    return %arg0, %c0_i32 : i32, i32
  }
  func.func @transform_1(%arg0: i32) -> (i32, i32) {
    %c0_i32 = arith.constant 0 : i32
    %c0_i32_0 = arith.constant 0 : i32
    return %arg0, %c0_i32 : i32, i32
  }
  func.func @transform_2(%arg0: i32) -> (i32, i32) {
    %c0_i32 = arith.constant 0 : i32
    %c0_i32_0 = arith.constant 0 : i32
    return %arg0, %c0_i32 : i32, i32
  }
  func.func @transform_3(%arg0: i32) -> (i32, i32, i32) {
    %c0_i32 = arith.constant 0 : i32
    %c0_i32_0 = arith.constant 0 : i32
    %c0_i32_1 = arith.constant 0 : i32
    return %arg0, %c0_i32, %c0_i32_0 : i32, i32, i32
  }
}

</mosaic_0001>

<bundles_post_ra>
// kernel: tpu_custom_call.1
= control target key start
LH: loop header
LB: loop body
LE: loop exit
PB: predicated region body
PF: predicated region fallthrough
CT: control target
= control target key end

     0   :  { %8 = vsyncpa [#allocation3], 0  ;;  %s246_s0 = inlined_call_operand.hbm [shape: f32[16,32], index: 0, kind: input, shape index: {}]   ;;  %s247_s1 = inlined_call_operand.hbm [shape: f32[16,32], index: 1, kind: input, shape index: {}]   ;;  %s248_s2 = inlined_call_operand.hbm [shape: f32[16,32], index: 2, kind: input, shape index: {}]   ;;  %s249_s3 = inlined_call_operand.hbm [shape: f32[1,8,128], index: 3, kind: output, shape index: {}]  }
   0x1   :  { %9 = vsyncpa [#allocation6], 0 }
   0x2   :  { %10 = vsyncpa [#allocation4], 0  ;;  %s208_s12 = smov [#allocation5]   ;;  %s209_s14 = smov [#allocation2]  }
   0x3   :  { %s28_s13 = sshll.u32 %s208_s12, 4  ;;  %s16_s15 = sshll.u32 %s209_s14, 4  ;;  %s29_s13 = int_to_ptr.vmem [resolvable:$true] %s28_s13  ;;  %s17_s15 = int_to_ptr.vmem [resolvable:$true] %s16_s15 }
   0x4   :  { %s130_s16 = scalar_lea.vmem %s29_s13, 256  ;;  %p135_p1 = scmp.lt.s32.totalorder %s29_s13, %s29_s13 }
   0x5   :  { %p131_p0 = scmp.ne.s32.totalorder %s29_s13, %s130_s16  ;;  %p136_p2 = scmp.lt.s32.totalorder %s130_s16, %s130_s16 }
   0x7   :  { %p137_p3 = por %p136_p2, %p135_p1 }
   0x9   :  { %p138_p4 = pnand %p137_p3, %p131_p0 }
   0xb   :  { %141 = shalt.err (!%p138_p4)
}
   0xc   :  { %s210_s17 = smov 128   ;;  %s211_s18 = smov 8  }
   0xd   :  { %34 = dma.hbm_to_vmem [thread:$0]  %s247_s1, 256, %s29_s13, [#allocation6], %s210_s17, %s210_s17, %s211_s18  }
   0xe   :  { %s150_s21 = scalar_lea.vmem %s17_s15, 256  ;;  %p155_p6 = scmp.lt.s32.totalorder %s17_s15, %s17_s15 }
   0xf   :  { %p151_p5 = scmp.ne.s32.totalorder %s17_s15, %s150_s21  ;;  %p156_p7 = scmp.lt.s32.totalorder %s150_s21, %s150_s21 }
  0x11   :  { %p157_p8 = por %p156_p7, %p155_p6 }
  0x13   :  { %p158_p9 = pnand %p157_p8, %p151_p5 }
  0x15   :  { %161 = shalt.err (!%p158_p9)
}
  0x16   :  { %22 = dma.hbm_to_vmem [thread:$0]  %s246_s0, 256, %s17_s15, [#allocation3], %s210_s17, %s210_s17, %s211_s18  }
  0x17   :  { %s212_s24 = smov [#allocation7]  }
  0x18   :  { %s40_s25 = sshll.u32 %s212_s24, 4  ;;  %s41_s25 = int_to_ptr.vmem [resolvable:$true] %s40_s25 }
  0x19   :  { %s170_s26 = scalar_lea.vmem %s41_s25, 256  ;;  %p175_p11 = scmp.lt.s32.totalorder %s41_s25, %s41_s25 }
  0x1a   :  { %p171_p10 = scmp.ne.s32.totalorder %s41_s25, %s170_s26  ;;  %p176_p12 = scmp.lt.s32.totalorder %s170_s26, %s170_s26 }
  0x1c   :  { %p177_p13 = por %p176_p12, %p175_p11 }
  0x1e   :  { %p178_p0 = pnand %p177_p13, %p171_p10 }
  0x20   :  { %181 = shalt.err (!%p178_p0)
}
  0x21   :  { %46 = dma.hbm_to_vmem [thread:$0]  %s248_s2, 256, %s41_s25, [#allocation6], %s210_s17, %s210_s17, %s211_s18  }
  0x22   :  { %202 = dma.done.wait [#allocation3], 256  }
  0x23   :  { %203 = vsyncadd [#allocation3], 4294967040 }
  0x24   :  { %204 = dma.done.wait [#allocation6], 512  }
  0x25   :  { %205 = vsyncadd [#allocation6], 4294966784  ;;  %v56_v0 = vld [vmem:[#allocation2] sm:$0xff]  ;;  %v58_v1 = vld [vmem:[#allocation5] sm:$0xff]  ;;  %vm72_vm0 = vcmask 261120   ;;  %vm83_vm1 = vcmask 7168  }
  0x26   :  { %v60_v2 = vld [vmem:[#allocation7] sm:$0xff]  ;;  %v62_v3 = vsub.f32 %v56_v0, %v58_v1  ;;  %v57_v5 = vld [vmem:[#allocation2 + $0x8] sm:$0xff]  ;;  %v59_v6 = vld [vmem:[#allocation5 + $0x8] sm:$0xff]  ;;  %s213_s0 = smov [#allocation8]  }
  0x27   :  { %v64_v4 = vsub.f32 %v56_v0, %v60_v2  ;;  %v61_v7 = vld [vmem:[#allocation7 + $0x8] sm:$0xff]  ;;  %v63_v8 = vsub.f32 %v57_v5, %v59_v6  ;;  %s104_s2 = sshll.u32 %s213_s0, 4  ;;  %s105_s2 = int_to_ptr.vmem [resolvable:$true] %s104_s2 }
  0x28   :  { %v65_v9 = vsub.f32 %v57_v5, %v61_v7  ;;  %v66_v10 = vmul.f32 %v62_v3, %v62_v3  ;;  %s182_s29 = scalar_lea.vmem %s105_s2, 128  ;;  %p187_p2 = scmp.lt.s32.totalorder %s105_s2, %s105_s2 }
  0x29   :  { %v68_v11 = vmul.f32 %v64_v4, %v64_v4  ;;  %v67_v12 = vmul.f32 %v63_v8, %v63_v8  ;;  %p183_p1 = scmp.ne.s32.totalorder %s105_s2, %s182_s29  ;;  %p188_p3 = scmp.lt.s32.totalorder %s182_s29, %s182_s29 }
  0x2a   :  { %v69_v13 = vmul.f32 %v65_v9, %v65_v9 }
  0x2b   :  { %v70_v14 = vsub.f32 %v66_v10, %v68_v11  ;;  %p189_p4 = por %p188_p3, %p187_p2 }
  0x2c   :  { %v71_v15 = vsub.f32 %v67_v12, %v69_v13 }
  0x2d   :  { %v73_v16 = vsel %vm72_vm0, %v70_v14, 0.0  ;;  %p190_p5 = pnand %p189_p4, %p183_p1 }
  0x2e   :  { %74 = vadd.xlane.f32.xlu0 %v73_v16  ;;  %v76_v17 = vsel %vm72_vm0, %v71_v15, 0.0 }
  0x32   :  { %77 = vadd.xlane.f32.xlu0 %v76_v17 }
  0xb7   :  { %v75_v18 = vpop.xlane.xlu0 %74 }
  0xb8   :  { %v79_v19 = vadd.f32 1.0, %v75_v18 }
  0xba   :  { %v81_v21 = vmax.f32 %v79_v19, 0.0 }
  0xbb   :  { %v78_v20 = vpop.xlane.xlu0 %77 }
  0xbc   :  { %v80_v22 = vadd.f32 1.0, %v78_v20  ;;  %v84_v24 = vsel %vm83_vm1, %v81_v21, 0.0 }
  0xbe   :  { %v82_v23 = vmax.f32 %v80_v22, 0.0 }
  0xc0   :  { %v85_v25 = vsel %vm83_vm1, %v82_v23, 0.0 }
  0xc1   :  { %v86_v26 = vadd.f32 %v85_v25, %v84_v24 }
  0xc3   :  { %87 = vadd.xlane.f32.xlu1 %v86_v26 }
 0x14c   :  { %v88_v27 = vpop.xlane.xlu1 %87 }
 0x14d   :  { %v89_v28 = vrot.slane %v88_v27, 4 }
 0x14f   :  { %v90_v29 = vadd.f32 %v89_v28, %v88_v27 }
 0x151   :  { %v91_v30 = vrot.slane %v90_v29, 2 }
 0x153   :  { %v92_v31 = vadd.f32 %v91_v30, %v90_v29 }
 0x155   :  { %v93_v32 = vrot.slane %v92_v31, 1 }
 0x157   :  { %v94_v33 = vadd.f32 %v93_v32, %v92_v31 }
 0x159   :  { %114 = vpush %v94_v33 }
 0x18a   :  { %s115_s28 = spop %114 }
 0x18b   :  { %v96_v34 = vstv %s115_s28 }
 0x18c   :  { %97 = vst [vmem:[#allocation8] sm:$0xff] %v96_v34 }
 0x18d   :  { %193 = shalt.err (!%p190_p5)
}
 0x18e   :  { %107 = dma.vmem_to_hbm [thread:$0]  %s105_s2, 128, %s249_s3, [#allocation4]  }
 0x18f   :  { %206 = dma.done.wait [#allocation4], 128  }
 0x190   :  { %207 = vsyncadd [#allocation4], 4294967168 }
 0x191   :  { %111 = vsyncpa [#allocation3], 1 }
 0x192   :  { %112 = vsyncpa [#allocation6], 1 }
 0x193   :  { %113 = vsyncpa [#allocation4], 1 }

</bundles_post_ra>
